<compile_context>
chip_gen: v7x
topology: tpu7x:2x2x1
jax: 0.10.0
libtpu: 0.0.40
codegen_flags: <defaults>
</compile_context>

<pallas_src>
import math

import jax
import jax.numpy as jnp
from jax.experimental import pallas as pl
from jax.experimental.pallas import tpu as pltpu


# ----------------------------------------------------------------------------
# tuning constants
# ----------------------------------------------------------------------------
_LANE = 128
_SUBLANE = 8
_TILE_CAP = 512                       # <=512x512 f32 block = 1 MiB -> VMEM-safe on v5e/v6e/v7x
_MIN_GRID_STEPS = 4                   # give both v7x TensorCores >= 2 steps when possible
_BLOCK_TARGET_BYTES = 512 * 1024      # target block size when batching tiny matrices
_VMEM_LIMIT_BYTES = 32 * 1024 * 1024  # explicit, generous but v7x-safe scoped-VMEM budget


def _prod(xs):
    return int(math.prod(xs))


def _initial_tile(d):
    # Full-dim blocks for small / unaligned dims (legal: block == full dim, moves
    # only real bytes); otherwise a 128-multiple tile + cdiv boundary masking.
    return d if d <= _TILE_CAP else _TILE_CAP


def _shrink_tile(t):
    # Next smaller lane-legal (multiple-of-128) tile, or t if it cannot shrink.
    cand = ((t - 1) // _LANE) * _LANE
    return cand if cand >= _LANE else t


def _cost(nelems, itemsize):
    # Pure data movement: read + write every element once.
    return pl.CostEstimate(flops=0, transcendentals=0,
                           bytes_accessed=2 * int(nelems) * int(itemsize))


# ----------------------------------------------------------------------------
# kernels
# ----------------------------------------------------------------------------
def _transpose_tile_kernel(x_ref, o_ref):
    # (1, tm, tn) -> (1, tn, tm): 2-D XLU tile transpose, dtype preserved.
    o_ref[0] = x_ref[0].T


def _transpose_batch_kernel(x_ref, o_ref):
    # (bb, M, N) -> (bb, N, M): batched minor-dims transpose for tiny matrices.
    o_ref[...] = jnp.swapaxes(x_ref[...], 1, 2)


def _copy_tile_kernel(x_ref, o_ref):
    # Lane-dense copy; the output BlockSpec permutes the block indices.
    o_ref[...] = x_ref[...]


# ----------------------------------------------------------------------------
# swap of the last two dims (the FastSpeech2 Transpose(-1, -2) path)
# ----------------------------------------------------------------------------
def _swap_last_two_3d(x3):
    B, M, N = x3.shape
    itemsize = x3.dtype.itemsize

    tm, tn = _initial_tile(M), _initial_tile(N)
    # Need a few grid steps so "parallel" sharding feeds both TensorCores.
    # Shrink tn first so tm (the OUTPUT block's lane dim) stays wide.
    while B * pl.cdiv(M, tm) * pl.cdiv(N, tn) < _MIN_GRID_STEPS:
        new_tn = _shrink_tile(tn)
        if new_tn != tn:
            tn = new_tn
            continue
        new_tm = _shrink_tile(tm)
        if new_tm != tm:
            tm = new_tm
            continue
        break

    # Batch several whole tiny matrices per block: fewer ~0.35us grid steps and
    # longer DMA bursts for batch-of-small-matrix transposes.
    bb = 1
    if tm == M and tn == N and B > 1:
        per_mat = M * N * itemsize
        if per_mat < _BLOCK_TARGET_BYTES:
            bb = min(B,
                     max(1, _BLOCK_TARGET_BYTES // per_mat),
                     max(1, B // _MIN_GRID_STEPS))

    kernel = _transpose_batch_kernel if bb > 1 else _transpose_tile_kernel
    grid = (pl.cdiv(B, bb), pl.cdiv(M, tm), pl.cdiv(N, tn))

    return pl.pallas_call(
        kernel,
        out_shape=jax.ShapeDtypeStruct((B, N, M), x3.dtype),
        grid=grid,
        in_specs=[pl.BlockSpec((bb, tm, tn), lambda b, i, j: (b, i, j))],
        out_specs=pl.BlockSpec((bb, tn, tm), lambda b, i, j: (b, j, i)),
        compiler_params=pltpu.CompilerParams(
            dimension_semantics=("parallel", "parallel", "parallel"),
            vmem_limit_bytes=_VMEM_LIMIT_BYTES),
        cost_estimate=_cost(x3.size, itemsize),
    )(x3)


def _swap_last_two(x):
    """Swap the last two dims of x (rank >= 2, any dtype) with the tiled kernel."""
    shp = x.shape
    M, N = shp[-2], shp[-1]
    out_shp = shp[:-2] + (N, M)
    if M == 1 or N == 1:
        return x.reshape(out_shp)        # adjacent size-1 swap: free reshape
    x3 = x.reshape((-1, M, N))
    if M < _SUBLANE or N < _SUBLANE:
        # Degenerate (<8) dims are rare: pad that dim to a sublane multiple so
        # the in-kernel 2-D transpose keeps a well-supported layout.
        pm, pn = (-M) % _SUBLANE, (-N) % _SUBLANE
        y3 = _swap_last_two_3d(jnp.pad(x3, ((0, 0), (0, pm), (0, pn))))
        return y3[:, :N, :M].reshape(out_shp)
    return _swap_last_two_3d(x3).reshape(out_shp)


# ----------------------------------------------------------------------------
# swap of two dims that are both before the last two: single copy kernel
# ----------------------------------------------------------------------------
def _swap_leading(x, d1, d2):
    shp = x.shape
    r = x.ndim
    P = _prod(shp[:d1])                   # dims before d1 (folded)
    A = shp[d1]
    R = _prod(shp[d1 + 1:d2])             # dims between d1 and d2 (folded)
    B2 = shp[d2]
    QM = _prod(shp[d2 + 1:r - 1])         # every dim after d2 except the last (folded)
    N = shp[r - 1]
    itemsize = x.dtype.itemsize

    xw = x.reshape(P, A, R, B2, QM, N)     # contiguous (free) reshape
    tqm, tn = _initial_tile(QM), _initial_tile(N)

    grid = (P * A, R * B2, pl.cdiv(QM, tqm), pl.cdiv(N, tn))
    blk = (1, 1, 1, 1, tqm, tn)

    def in_map(pa, rb, q, n):
        return (pa // A, pa % A, rb // B2, rb % B2, q, n)

    def out_map(pa, rb, q, n):
        # Output working array is (P, B2, R, A, QM, N): swap A / B2 block indices.
        return (pa // A, rb % B2, rb // B2, pa % A, q, n)

    yw = pl.pallas_call(
        _copy_tile_kernel,
        out_shape=jax.ShapeDtypeStruct((P, B2, R, A, QM, N), x.dtype),
        grid=grid,
        in_specs=[pl.BlockSpec(blk, in_map)],
        out_specs=pl.BlockSpec(blk, out_map),
        compiler_params=pltpu.CompilerParams(
            dimension_semantics=("parallel",) * 4,
            vmem_limit_bytes=_VMEM_LIMIT_BYTES),
        cost_estimate=_cost(x.size, itemsize),
    )(xw)

    out_shp = list(shp)
    out_shp[d1], out_shp[d2] = out_shp[d2], out_shp[d1]
    return yw.reshape(tuple(out_shp))


# ----------------------------------------------------------------------------
# mixed swaps (a leading dim with one of the last two): composed single-pass
# tiled transposes separated by contiguous (free) reshapes.
# ----------------------------------------------------------------------------
def _swap_lead_last(x, d1):
    """Swap leading dim d1 with the LAST dim."""
    r = x.ndim
    shp = x.shape
    P = _prod(shp[:d1])
    A = shp[d1]
    Q = _prod(shp[d1 + 1:r - 1])
    N = shp[r - 1]
    out_shp = shp[:d1] + (N,) + shp[d1 + 1:r - 1] + (A,)
    if Q == 1:
        # Nothing between the swapped dims: one last-two-dim transpose.
        return _swap_last_two(x.reshape(P, A, N)).reshape(out_shp)
    # TODO(synk): a fused single-pass kernel here needs a minor-dim-preserving
    # multi-axis block transpose Mosaic does not expose cleanly; composed from
    # two single-pass tiled transposes (2 HBM round trips) instead.
    y = _swap_last_two(x.reshape(P * A, Q, N))     # (P*A, N, Q)
    z = _swap_last_two(y.reshape(P, A, N * Q))     # (P, N*Q, A)
    return z.reshape(out_shp)


# ----------------------------------------------------------------------------
# public entry point
# ----------------------------------------------------------------------------
def pallas_transpose(x, dim_1, dim_2):
    """x.transpose(dim_1, dim_2) with PyTorch semantics (swap exactly two dims)."""
    x = jnp.asarray(x)
    r = x.ndim
    if r < 2:
        return x
    d1, d2 = sorted((dim_1 % r, dim_2 % r))
    if d1 == d2:
        return x
    shp = x.shape
    out_shp = list(shp)
    out_shp[d1], out_shp[d2] = out_shp[d2], out_shp[d1]
    out_shp = tuple(out_shp)

    if x.size == 0:
        return jnp.swapaxes(x, d1, d2)            # nothing to move
    if shp[d1] == 1 and shp[d2] == 1:
        return x                                   # identity
    # Zero-copy fast path: moving a size-1 axis over size-1 axes keeps
    # row-major order, so the swap is a free reshape.
    if (shp[d1] == 1 or shp[d2] == 1) and all(s == 1 for s in shp[d1 + 1:d2]):
        return x.reshape(out_shp)

    if d1 >= r - 2:                                # swap of the last two dims
        return _swap_last_two(x)
    if d2 < r - 2:                                 # both dims before the last two
        return _swap_leading(x, d1, d2)
    if d2 == r - 1:                                # leading dim <-> last dim
        return _swap_lead_last(x, d1)
    # leading dim <-> second-last dim:  T(-1,-2) o swap(d1, last) o T(-1,-2)
    return _swap_last_two(_swap_lead_last(_swap_last_two(x), d1))


class Transpose:
    """Pallas TPU drop-in for the PyTorch `Transpose(dim_1, dim_2)` module."""

    def __init__(self, dim_1, dim_2):
        self.dim_1 = dim_1
        self.dim_2 = dim_2

    def __call__(self, x):
        return pallas_transpose(x, self.dim_1, self.dim_2)


# ----------------------------------------------------------------------------
if __name__ == "__main__":
    key = jax.random.PRNGKey(0)

    def rand(k, shape, dtype):
        return jax.random.normal(k, shape, dtype=jnp.float32).astype(dtype)

    cases = [
        # (shape, dtype, dim_1, dim_2) -- FastSpeech2 itself uses Transpose(-1, -2)
        ((2, 192, 256), jnp.bfloat16, -1, -2),   # (B, T, C) around Conv1d; megacore split
        ((2, 3, 24, 40), jnp.float32, 2, 3),     # small unaligned trailing dims -> full-dim blocks
        ((1, 640, 384), jnp.float32, -2, -1),    # dim > 512 -> 512-tiles + cdiv boundary masking
        ((64, 8, 24), jnp.float32, 1, 2),        # many tiny matrices -> batched blocks
        ((3, 2, 64, 128), jnp.float32, 0, 1),    # leading<->leading: block-index-remap copy
        ((2, 8, 16, 128), jnp.float32, 1, 3),    # leading<->last (composed tiled transposes)
        ((2, 8, 16, 128), jnp.float32, 1, 2),    # leading<->second-last (composed)
        ((2, 1, 16, 32), jnp.float32, 1, 2),     # size-1 swapped dim -> zero-copy reshape
    ]

    keys = jax.random.split(key, len(cases))
    for k, (shape, dtype, d1, d2) in zip(keys, cases):
        x = rand(k, shape, dtype)
        mod = Transpose(d1, d2)
        y = jax.block_until_ready(jax.jit(mod)(x))
        ref = jnp.swapaxes(x, d1, d2)
        assert y.shape == ref.shape, (shape, d1, d2, y.shape, ref.shape)
        assert y.dtype == x.dtype, (shape, d1, d2, y.dtype, x.dtype)
        assert bool(jnp.array_equal(y, ref)), ("mismatch", shape, d1, d2)

    print("KERNEL_OK")
</pallas_src>

<mosaic_0001>
module attributes {stable_mosaic.version = 11 : i64} {
  func.func @_transpose_tile_kernel(%arg0: i32, %arg1: i32, %arg2: i32, %arg3: memref<1x192x128xbf16, #tpu.memory_space<vmem>>, %arg4: memref<1x128x192xbf16, #tpu.memory_space<vmem>>) attributes {dimension_semantics = [#tpu.dimension_semantics<parallel>, #tpu.dimension_semantics<parallel>, #tpu.dimension_semantics<parallel>], iteration_bounds = array<i64: 2, 1, 2>, scalar_prefetch = 0 : i64, scratch_operands = 0 : i64, tpu.core_type = #tpu.core_type<tc>, window_params = [{transform_indices = @transform_0, window_bounds = array<i64: 1, 192, 128>}, {transform_indices = @transform_1, window_bounds = array<i64: 1, 128, 192>}]} {
    %c0 = arith.constant 0 : index
    %c0_0 = arith.constant 0 : index
    %c0_1 = arith.constant 0 : index
    %0 = vector.load %arg3[%c0, %c0_0, %c0_1] : memref<1x192x128xbf16, #tpu.memory_space<vmem>>, vector<1x192x128xbf16>
    %1 = vector.shape_cast %0 : vector<1x192x128xbf16> to vector<192x128xbf16>
    %2 = tpu.transpose %1, [1, 0] : vector<192x128xbf16> -> vector<128x192xbf16>
    %c0_2 = arith.constant 0 : index
    %c0_3 = arith.constant 0 : index
    %c0_4 = arith.constant 0 : index
    %3 = vector.load %arg4[%c0_2, %c0_3, %c0_4] : memref<1x128x192xbf16, #tpu.memory_space<vmem>>, vector<1x128x192xbf16>
    %4 = vector.shape_cast %3 : vector<1x128x192xbf16> to vector<128x192xbf16>
    %5 = vector.shape_cast %2 : vector<128x192xbf16> to vector<1x128x192xbf16>
    tpu.vector_store %arg4[%c0_2, %c0_3, %c0_4], %5 {strides = array<i32>} : memref<1x128x192xbf16, #tpu.memory_space<vmem>>, vector<1x128x192xbf16>,
    return
  }
  func.func @transform_0(%arg0: i32, %arg1: i32, %arg2: i32) -> (i32, i32, i32) {
    %c0_i32 = arith.constant 0 : i32
    return %arg0, %arg1, %arg2 : i32, i32, i32
  }
  func.func @transform_1(%arg0: i32, %arg1: i32, %arg2: i32) -> (i32, i32, i32) {
    %c0_i32 = arith.constant 0 : i32
    return %arg0, %arg2, %arg1 : i32, i32, i32
  }
}

</mosaic_0001>

<bundles_post_ra>
// kernel: _unnamed_function_.1
= control target key start
LH: loop header
LB: loop body
LE: loop exit
PB: predicated region body
PF: predicated region fallthrough
CT: control target
= control target key end

     0   :  { %6 = vsyncpa [#allocation3], 0  ;;  %s978_s0 = inlined_call_operand.hbm [shape: bf16[2,192,256], index: 0, kind: input, shape index: {}]   ;;  %s979_s1 = inlined_call_operand.vmem [shape: bf16[2,256,192], index: 1, kind: output, shape index: {}]  }
   0x1   :  { %8 = vsyncpa [#allocation3 + $0x1], 0  ;;  %s780_s6 = smov 0   ;;  %s782_s7 = smov 0  }
   0x2   :  { %s784_s8 = smov 0   ;;  %s786_s9 = smov 0  }
   0x3   :  { %s788_s10 = smov 0   ;;  %s790_s11 = smov 0  }
   0x4   :  { %s792_s12 = smov 0   ;;  %s794_s13 = smov 0  }
   0x5 LB: > { %s538_s14 = sadd.s32 4294967295, %s764_s13   ;;  %s26_s15 = sadd.s32 1, %s756_s11  ;;  %s764_s13 = sphi %s794_s13, %s14_s13   ;;  %s760_s12 = sphi %s792_s12, %s991_s12   ;;  %s756_s11 = sphi %s790_s11, %s990_s11   ;;  %s752_s10 = sphi %s788_s10, %s989_s10   ;;  %s748_s9 = sphi %s786_s9, %s988_s9   ;;  %s744_s8 = sphi %s784_s8, %s987_s8   ;;  %s740_s7 = sphi %s782_s7, %s986_s7   ;;  %s736_s6 = sphi %s780_s6, %s985_s6  }
   0x6   : > { %p27_p0 = scmp.ge.s32.totalorder %s26_s15, 2  ;;  %s33_s16 = sadd.s32 1, %s760_s12 }
   0x7   : > { %s44_s17 = sadd.s32 1, %s744_s8  ;;  %p51_p1 = scmp.ne.s32.totalorder %s744_s8, %s740_s7 }
   0x8   : > { %s993_s15 = smov (%p27_p0, %s26_s15), 0  ;;  %s995_s16 = smov (!%p27_p0, %s33_s16), %s760_s12 }
   0x9   : > { %s40_s18 = ssub.s32 %s756_s11, %s993_s15  ;;  %p52_p2 = scmp.eq.s32.totalorder %s764_s13, 0 }
   0xa   : > { %p35_p3 = scmp.ge.s32.totalorder %s995_s16, 2  ;;  %p57_p4 = scmp.ne.s32.totalorder %s740_s7, %s736_s6 }
   0xb   : > { %p53_p5 = por %p52_p2, %p51_p1  ;;  %p58_p6 = scmp.eq.s32.totalorder %s538_s14, 0 }
   0xc   : > { %s997_s16 = smov (%p35_p3, %s995_s16), 0  ;;  %p587_p8 = scmp.lt.s32.totalorder %s764_s13, 4 }
   0xd   : > { %p833_p7 = por %p58_p6, %p57_p4  ;;  %s37_s20 = ssub.s32 %s760_s12, %s997_s16 }
   0xe   : > { %s41_s21 = sor.u32 %s40_s18, %s37_s20  ;;  %s111_s22 = sand.u32 1, %s744_s8  }
   0xf   : > { %p42_p9 = scmp.eq.s32.totalorder %s41_s21, 0  ;;  %s578_s23 = smul.u32 96, %s111_s22 }
  0x10   : > { %p841_p10 = pnand %p587_p8, %p53_p5  ;;  %s579_s26 = smul.u32 48, %s760_s12 }
  0x11   : > { %s846_s25 = scalar_select %p42_p9, %s744_s8, %s44_s17  }
  0x12   : > { %s115_s27 = scalar_lea.vmem [#allocation2], %s578_s23  ;;  %s123_s29 = sadd.s32 %s756_s11, %s579_s26 }
  0x13   : > { %s126_s28 = sshll.u32 %s115_s27, 4  ;;  %s542_s30 = sshll.u32 %s123_s29, 6  ;;  %s850_s28 = int_to_ptr.vmem [resolvable:$true] %s126_s28 }
  0x14   : > { %s855_s4 = scalar_lea.hbm %s978_s0, %s542_s30  ;;  %s858_s5 = scalar_lea.sflag [#allocation3], %s111_s22 }
  0x15   : > { %s668_s6 = scalar_lea.hbm %s855_s4, 1536  ;;  %p670_p13 = pneg %p841_p10 }
  0x16   : > { %p669_p12 = scmp.ne.s32.totalorder %s855_s4, %s668_s6  ;;  %s673_s18 = scalar_lea.hbm %s978_s0, 6144 }
  0x17   : > { %p674_p2 = scmp.lt.u32.totalorder %s855_s4, %s978_s0  ;;  %p675_p3 = scmp.lt.u32.totalorder %s673_s18, %s668_s6 }
  0x18   : > { %p671_p0 = pnand %p670_p13, %p669_p12  ;;  %p677_p5 = scmp.lt.u32.totalorder %s668_s6, %s855_s4 }
  0x19   : > { %p676_p4 = por %p675_p3, %p674_p2 }
  0x1a   : > { %p672_p1 = pneg %p671_p0 }
  0x1b   : > { %p678_p6 = por %p677_p5, %p676_p4 }
  0x1d   : > { %p679_p8 = pnand %p678_p6, %p672_p1 }
  0x1f   : > { %682 = shalt.err (!%p679_p8)
}
  0x20   : > { %s683_s22 = scalar_lea.vmem %s850_s28, 1536  ;;  %s766_s23 = smov [#allocation2]  }
  0x21   : > { %p684_p9 = scmp.ne.s32.totalorder %s850_s28, %s683_s22  ;;  %s688_s26 = sshll.u32 %s766_s23, 4  ;;  %s689_s26 = int_to_ptr.vmem [resolvable:$false] %s688_s26 }
  0x22   : > { %s690_s27 = scalar_lea.vmem %s689_s26, 3072  ;;  %p691_p11 = scmp.lt.s32.totalorder %s850_s28, %s689_s26 }
  0x23   : > { %p686_p12 = pnand %p684_p9, %p670_p13  ;;  %p692_p2 = scmp.lt.s32.totalorder %s690_s27, %s683_s22 }
  0x25   : > { %p687_p0 = pneg %p686_p12  ;;  %p693_p3 = por %p692_p2, %p691_p11 }
  0x27   : > { %p694_p4 = pnand %p693_p3, %p687_p0 }
  0x29   : > { %697 = shalt.err (!%p694_p4)
}
  0x2a   : > { %s767_s29 = smov 128   ;;  %s768_s30 = smov 64  }
  0x2b   : > { %s769_s2 = smov 4   ;;  %p134_p13 = scmp.lt.s32.totalorder %s764_s13, 5 }
  0x2c   : > { %586 = dma.hbm_to_vmem [thread:$0]  (!%p841_p10), %s855_s4, 1536, %s850_s28, %s858_s5, %s767_s29, %s768_s30, %s769_s2  }
  0x2d   : > { %p982_p1 = scmp.ge.s32.totalorder %s764_s13, 1 }
  0x2f   : > { %p135_p5 = pnand %p982_p1, %p134_p13 }
  0x30   : > { %s140_s3 = sand.u32 (!%p135_p5), 1, %s740_s7  }
  0x31   : > { %138 = sbr.rel (%p135_p5) target bundleno = 193 (0xc1), region = 24  ;;  %s141_s14 = scalar_lea.sflag (!%p135_p5), [#allocation3], %s140_s3 }
  0x32   : > { %s580_s6 = smul.u32 (!%p135_p5), 96, %s140_s3 }
  0x34   : > { %s144_s17 = scalar_lea.vmem (!%p135_p5), [#allocation2], %s580_s6 }
  0x38   : > { %731 = dma.done.wait (%p833_p7), %s141_s14, 1536  }
  0x39   : > { %733 = vsyncadd (%p833_p7), %s141_s14, 4294965760  ;;  %v656_v0 = vld [vmem:[%s144_s17 + $0x40] sm:$0xff]   ;;  %v658_v2 = vld [vmem:[%s144_s17 + $0x48] sm:$0xff]   ;;  %s544_s19 = sshll.u32 %s748_s9, 4  ;;  %p175_p7 = scmp.lt.s32.totalorder %s752_s10, 1  ;;  %vm398_vm0 = vcmask 1043456  }
  0x3a   : > { %v657_v1 = vld [vmem:[%s144_s17] sm:$0xff]   ;;  %302 = vxpose.xlu1.c.b16.start [1/4] (short) %v656_v0, 128  ;;  %v659_v3 = vld [vmem:[%s144_s17 + $0x8] sm:$0xff]   ;;  %v660_v4 = vld [vmem:[%s144_s17 + $0x50] sm:$0xff]   ;;  %p177_p10 = scmp.lt.s32.totalorder %s544_s19, 31  ;;  %vm399_vm1 = vcmask 523268  }
  0x3b   : > { %286 = vxpose.xlu0.c.b16.start [1/8] %v657_v1, 128  ;;  %v661_v5 = vld [vmem:[%s144_s17 + $0x10] sm:$0xff]   ;;  %v662_v6 = vld [vmem:[%s144_s17 + $0x58] sm:$0xff]   ;;  %v664_v8 = vld [vmem:[%s144_s17 + $0x20] sm:$0xff]   ;;  %s999_s10 = smov (!%p175_p7, %s752_s10), 1 }
  0x3c   : > { %v663_v7 = vld [vmem:[%s144_s17 + $0x18] sm:$0xff]   ;;  %v665_v9 = vld [vmem:[%s144_s17 + $0x28] sm:$0xff]   ;;  %v666_v10 = vld [vmem:[%s144_s17 + $0x30] sm:$0xff]   ;;  %s1001_s19 = smov (!%p177_p10, %s544_s19), 31  ;;  %s546_s28 = sshll.u32 %s999_s10, 6 }
  0x3d   : > { %v667_v11 = vld [vmem:[%s144_s17 + $0x38] sm:$0xff]   ;;  %s545_s24 = sshll.u32 %s1001_s19, 1  ;;  %vm902_vm2 = vmor %vm399_vm1, %vm398_vm0 }
  0x3e   : > { %303 = vxpose.xlu1.c.b16.cont [2/4] (short) %v658_v2, 128  ;;  %s184_s4 = sadd.s32 %s546_s28, %s545_s24 }
  0x3f   : > { %287 = vxpose.xlu0.c.b16.cont [2/8] %v659_v3, 128  ;;  %s547_s5 = sshll.u32 %s184_s4, 2 }
  0x40   : > { %s900_s21 = scalar_lea.vmem %s979_s1, %s547_s5 }
  0x42   : > { %304 = vxpose.xlu1.c.b16.cont [3/4] (short) %v660_v4, 128 }
  0x43   : > { %288 = vxpose.xlu0.c.b16.cont [3/8] %v661_v5, 128 }
  0x46   : > { %305 = vxpose.xlu1.c.b16.end [4/4] (short) %v662_v6, 128 }
  0x47   : > { %289 = vxpose.xlu0.c.b16.cont [4/8] %v663_v7, 128 }
  0x4b   : > { %290 = vxpose.xlu0.c.b16.cont [5/8] %v664_v8, 128 }
  0x4f   : > { %291 = vxpose.xlu0.c.b16.cont [6/8] %v665_v9, 128 }
  0x53   : > { %292 = vxpose.xlu0.c.b16.cont [7/8] %v666_v10, 128 }
  0x57   : > { %293 = vxpose.xlu0.c.b16.end [8/8] %v667_v11, 128 }
  0xa0   : > { %v310_v12 = vpop.trf.xlu1 }
  0xa1   : > { %v294_v14 = vpop.trf.xlu0 }
  0xa2   : > { %v560_v15 = vcombine.low %v294_v14, %v310_v12  ;;  %v561_v16 = vcombine.high %v294_v14, %v310_v12 }
  0xa4   : > { %401 = vst.msk [vmem:[%s900_s21] sm:$0xff] %vm902_vm2, %v560_v15  ;;  %402 = vst.msk [vmem:[%s900_s21 + $0x8] sm:$0xff] %vm902_vm2, %v561_v16  ;;  %v311_v17 = vpop.trf.xlu1 }
  0xa5   : > { %v295_v18 = vpop.trf.xlu0 }
  0xa6   : > { %v562_v19 = vcombine.low %v295_v18, %v311_v17  ;;  %v563_v20 = vcombine.high %v295_v18, %v311_v17 }
  0xa8   : > { %403 = vst.msk [vmem:[%s900_s21 + $0x10] sm:$0xff] %vm902_vm2, %v562_v19  ;;  %404 = vst.msk [vmem:[%s900_s21 + $0x18] sm:$0xff] %vm902_vm2, %v563_v20  ;;  %v312_v21 = vpop.trf.xlu1 }
  0xa9   : > { %v296_v22 = vpop.trf.xlu0 }
  0xaa   : > { %v564_v23 = vcombine.low %v296_v22, %v312_v21  ;;  %v565_v24 = vcombine.high %v296_v22, %v312_v21 }
  0xac   : > { %405 = vst.msk [vmem:[%s900_s21 + $0x20] sm:$0xff] %vm902_vm2, %v564_v23  ;;  %406 = vst.msk [vmem:[%s900_s21 + $0x28] sm:$0xff] %vm902_vm2, %v565_v24  ;;  %v313_v25 = vpop.trf.xlu1 }
  0xad   : > { %v297_v26 = vpop.trf.xlu0 }
  0xae   : > { %v566_v27 = vcombine.low %v297_v26, %v313_v25  ;;  %v567_v28 = vcombine.high %v297_v26, %v313_v25 }
  0xb0   : > { %407 = vst.msk [vmem:[%s900_s21 + $0x30] sm:$0xff] %vm902_vm2, %v566_v27  ;;  %408 = vst.msk [vmem:[%s900_s21 + $0x38] sm:$0xff] %vm902_vm2, %v567_v28  ;;  %v314_v29 = vpop.trf.xlu1 }
  0xb1   : > { %v298_v30 = vpop.trf.xlu0 }
  0xb2   : > { %v568_v31 = vcombine.low %v298_v30, %v314_v29  ;;  %v569_v32 = vcombine.high %v298_v30, %v314_v29 }
  0xb4   : > { %409 = vst.msk [vmem:[%s900_s21 + $0x40] sm:$0xff] %vm902_vm2, %v568_v31  ;;  %410 = vst.msk [vmem:[%s900_s21 + $0x48] sm:$0xff] %vm902_vm2, %v569_v32  ;;  %v315_v33 = vpop.trf.xlu1 }
  0xb5   : > { %v299_v34 = vpop.trf.xlu0 }
  0xb6   : > { %v570_v35 = vcombine.low %v299_v34, %v315_v33  ;;  %v571_v36 = vcombine.high %v299_v34, %v315_v33 }
  0xb8   : > { %411 = vst.msk [vmem:[%s900_s21 + $0x50] sm:$0xff] %vm902_vm2, %v570_v35  ;;  %412 = vst.msk [vmem:[%s900_s21 + $0x58] sm:$0xff] %vm902_vm2, %v571_v36  ;;  %v316_v37 = vpop.trf.xlu1 }
  0xb9   : > { %v300_v38 = vpop.trf.xlu0 }
  0xba   : > { %v572_v39 = vcombine.low %v300_v38, %v316_v37  ;;  %v573_v40 = vcombine.high %v300_v38, %v316_v37 }
  0xbc   : > { %413 = vst.msk [vmem:[%s900_s21 + $0x60] sm:$0xff] %vm902_vm2, %v572_v39  ;;  %414 = vst.msk [vmem:[%s900_s21 + $0x68] sm:$0xff] %vm902_vm2, %v573_v40  ;;  %v317_v41 = vpop.trf.xlu1 }
  0xbd   : > { %v301_v42 = vpop.trf.xlu0 }
  0xbe   : > { %v574_v43 = vcombine.low %v301_v42, %v317_v41  ;;  %v575_v44 = vcombine.high %v301_v42, %v317_v41 }
  0xc0   : > { %415 = vst.msk [vmem:[%s900_s21 + $0x70] sm:$0xff] %vm902_vm2, %v574_v43  ;;  %416 = vst.msk [vmem:[%s900_s21 + $0x78] sm:$0xff] %vm902_vm2, %v575_v44 }
  0xc1 PF: > { %s14_s13 = sadd.s32 1, %s764_s13   ;;  %s985_s6 = smov %s740_s7 }
  0xc2   : > { %p11_p11 = scmp.ge.s32.totalorder %s14_s13, 6   ;;  %s986_s7 = smov %s744_s8 }
  0xc3   : > { %s987_s8 = smov %s846_s25  ;;  %s988_s9 = smov %s756_s11 }
  0xc4   : > { %s989_s10 = smov %s760_s12  ;;  %s990_s11 = smov %s993_s15 }
  0xc5   : > { %s991_s12 = smov %s997_s16  ;;  %13 = sbr.rel (!%p11_p11) target bundleno = 5 (0x5), region = 64 }
  0xcc   :  { %458 = vsyncpa [#allocation3], 1 }
  0xcd   :  { %460 = vsyncpa [#allocation3 + $0x1], 1 }

</bundles_post_ra>
